<compile_context>
chip_gen: v7x
topology: tpu7x:2x2x1
jax: 0.10.0
libtpu: 0.0.40
codegen_flags: <defaults>
</compile_context>

<pallas_src>
import functools

import jax
import jax.numpy as jnp
from jax.experimental import pallas as pl
from jax.experimental.pallas import tpu as pltpu


def _round_up(x, m):
    return (x + m - 1) // m * m


# ------------------------------ Pallas kernels --------------------------------
def _pe_matmul_kernel(x_ref, w_ref, b_ref, o_ref):
    """Full-K path: one MXU matmul + bias.  No scratch, no conditionals."""
    o_ref[...] = (jnp.dot(x_ref[...], w_ref[...],
                          preferred_element_type=jnp.float32)
                  + b_ref[...]).astype(o_ref.dtype)


def _pe_matmul_kernel_ktiled(x_ref, w_ref, b_ref, o_ref):
    """K-tiled fallback (only used when K > 2048): accumulate directly into the
    f32 output block (its index is constant along k, so it stays VMEM-resident);
    the bias is folded into the k == 0 initialisation."""
    k = pl.program_id(2)

    @pl.when(k == 0)
    def _():
        o_ref[...] = jnp.broadcast_to(b_ref[...], o_ref.shape).astype(o_ref.dtype)

    o_ref[...] += jnp.dot(x_ref[...], w_ref[...],
                          preferred_element_type=jnp.float32)


# ------------------------------ GEMM wrapper ----------------------------------
def patch_embed_matmul(patches, w_mat, bias, *, compute_dtype=jnp.bfloat16,
                       tm_default=512, max_tk=2048,
                       max_w_tile_bytes=8 * 1024 * 1024):
    """patches:(M,K) @ w_mat:(K,N) + bias:(N,) -> (M,N) float32."""
    M, K = patches.shape
    Kw, N = w_mat.shape
    assert K == Kw and bias.shape == (N,), (patches.shape, w_mat.shape, bias.shape)
    in_bytes = jnp.dtype(compute_dtype).itemsize

    # ---- K: full K in one block when it fits; otherwise minimal-pad tiles. ----
    if K <= max_tk:
        n_k, tk, Kp = 1, K, K                      # no K padding (e.g. K=768 stays 768)
    else:
        n_k = pl.cdiv(_round_up(K, 128), max_tk)
        tk = _round_up(pl.cdiv(K, n_k), 128)
        Kp = n_k * tk

    # ---- N: lane-dense (128-multiple); full N resident unless the W tile is huge. ----
    Np128 = _round_up(N, 128)
    max_tn = max(128, (max_w_tile_bytes // (tk * in_bytes)) // 128 * 128)
    n_n = 1 if Np128 <= max_tn else pl.cdiv(Np128, max_tn)
    tn = _round_up(pl.cdiv(Np128, n_n), 128)
    Np = n_n * tn

    # ---- M: tm up to 512; prefer >=2 M tiles (megacore) but never below 256. ----
    n_m = pl.cdiv(M, tm_default)
    if n_m == 1 and M >= 512:
        n_m = 2
    tm = max(8, _round_up(pl.cdiv(M, n_m), 8))
    Mp = _round_up(M, tm)

    # ---- pad (zeros don't change the GEMM) and cast operands. ----
    xp = patches if (Mp == M and Kp == K) else jnp.pad(patches,
                                                       ((0, Mp - M), (0, Kp - K)))
    xp = xp.astype(compute_dtype)
    wp = w_mat if (Kp == K and Np == N) else jnp.pad(w_mat,
                                                     ((0, Kp - K), (0, Np - N)))
    wp = wp.astype(compute_dtype)
    bp = bias.reshape(1, N).astype(jnp.float32)
    if Np != N:
        bp = jnp.pad(bp, ((0, 0), (0, Np - N)))

    grid_m, grid_n, grid_k = Mp // tm, Np // tn, Kp // tk

    # VMEM budget: double-buffered x/W/out/bias, request ~2x, stay well under
    # v7x's 64 MiB physical VMEM.
    vmem_est = (2 * tm * tk + 2 * tk * tn) * in_bytes + (2 * tm * tn + 2 * tn) * 4
    vmem_limit = int(min(32 * 1024 * 1024, max(8 * 1024 * 1024, 2 * vmem_est)))

    if grid_k == 1:
        # Hot path (production shapes): 2-D all-parallel grid, W loaded once.
        out = pl.pallas_call(
            _pe_matmul_kernel,
            out_shape=jax.ShapeDtypeStruct((Mp, Np), jnp.float32),
            grid=(grid_m, grid_n),
            in_specs=[
                pl.BlockSpec((tm, tk), lambda i, j: (i, 0)),
                pl.BlockSpec((tk, tn), lambda i, j: (0, j)),   # constant -> resident W
                pl.BlockSpec((1, tn), lambda i, j: (0, j)),    # constant -> bias once
            ],
            out_specs=pl.BlockSpec((tm, tn), lambda i, j: (i, j)),
            compiler_params=pltpu.CompilerParams(
                dimension_semantics=("parallel", "parallel"),
                vmem_limit_bytes=vmem_limit,
                allow_input_fusion=[True, False, False]),
        )(xp, wp, bp)
    else:
        out = pl.pallas_call(
            _pe_matmul_kernel_ktiled,
            out_shape=jax.ShapeDtypeStruct((Mp, Np), jnp.float32),
            grid=(grid_m, grid_n, grid_k),
            in_specs=[
                pl.BlockSpec((tm, tk), lambda i, j, k: (i, k)),
                pl.BlockSpec((tk, tn), lambda i, j, k: (k, j)),
                pl.BlockSpec((1, tn), lambda i, j, k: (0, j)),
            ],
            out_specs=pl.BlockSpec((tm, tn), lambda i, j, k: (i, j)),
            compiler_params=pltpu.CompilerParams(
                dimension_semantics=("parallel", "parallel", "arbitrary"),
                vmem_limit_bytes=vmem_limit,
                allow_input_fusion=[True, False, False]),
        )(xp, wp, bp)

    if Mp == M and Np == N:
        return out
    return out[:M, :N]


# ------------------------------ module forward --------------------------------
def prepare_patch_embed_weights(proj_w, proj_b, *, compute_dtype=jnp.bfloat16):
    """Hoisted weight re-layout (do this once per weight update, not per call):
    proj_w:(E,C,P,P) -> w_mat:(C*P*P, E) in compute_dtype, proj_b -> f32."""
    E, C, P, _ = proj_w.shape
    w_mat = jnp.transpose(proj_w.reshape(E, C * P * P)).astype(compute_dtype)
    b_row = proj_b.astype(jnp.float32)
    return w_mat, b_row


def patch_embed_apply(x, w_mat, bias, *, patch_size, compute_dtype=jnp.bfloat16):
    """x:(B,C,H,W), w_mat:(C*P*P, E), bias:(E,) -> (B, n_patches, E) float32."""
    B, C, H, W = x.shape
    P = patch_size
    Hp, Wp = H // P, W // P
    K, E = w_mat.shape
    assert K == C * P * P

    # stride==kernel conv == non-overlapping patchify (pure layout permutation,
    # no im2col expansion) + linear projection.  allow_input_fusion on this
    # operand lets XLA fold the transpose into the Pallas operand copy.
    patches = x.reshape(B, C, Hp, P, Wp, P)
    patches = patches.transpose(0, 2, 4, 1, 3, 5)            # (B,Hp,Wp,C,P,P)
    patches = patches.reshape(B * Hp * Wp, K)                # rows: (b,hp,wp)

    tok = patch_embed_matmul(patches, w_mat, bias, compute_dtype=compute_dtype)
    # row order (b, hp, wp) == Conv2d(...).flatten(2).transpose(1, 2)
    return tok.reshape(B, Hp * Wp, E)


def patch_embed_forward(x, proj_w, proj_b, *, patch_size,
                        compute_dtype=jnp.bfloat16):
    """Drop-in equivalent of PatchEmbed.forward: (B,C,H,W) -> (B,n_patches,E).
    compute_dtype=jnp.float32 gives PyTorch-parity numerics; bf16 operands
    (f32 accumulation, f32 output) is the fast MXU path on v5e/v6e/v7x."""
    w_mat, b_row = prepare_patch_embed_weights(proj_w, proj_b,
                                               compute_dtype=compute_dtype)
    return patch_embed_apply(x, w_mat, b_row, patch_size=patch_size,
                             compute_dtype=compute_dtype)


# ----------------------------------- main --------------------------------------
if __name__ == "__main__":
    def run_case(key, B, C, IMG, P, E, compute_dtype, tol):
        kx, kw, kb = jax.random.split(key, 3)
        # Integer-valued inputs scaled by powers of two: exact in bf16 and in
        # f32 accumulation, so every compute path (and the XLA reference conv,
        # at any matmul-precision default) agrees to tight tolerance — this
        # checks layout / indexing / bias handling, not rounding modes.
        x = jax.random.randint(kx, (B, C, IMG, IMG), -4, 5).astype(jnp.float32)
        w = jax.random.randint(kw, (E, C, P, P), -4, 5).astype(jnp.float32) / 64.0
        b = jax.random.randint(kb, (E,), -32, 33).astype(jnp.float32) / 64.0

        fwd = jax.jit(functools.partial(patch_embed_forward, patch_size=P,
                                        compute_dtype=compute_dtype))
        y = jax.block_until_ready(fwd(x, w, b))
        n_patches = (IMG // P) ** 2
        assert y.shape == (B, n_patches, E), y.shape

        # Independent reference: lax.conv + bias (the bias was missing before).
        conv = jax.lax.conv_general_dilated(
            x, w, window_strides=(P, P), padding="VALID",
            dimension_numbers=("NCHW", "OIHW", "NCHW"),
            precision=jax.lax.Precision.HIGHEST)
        ref = (conv + b[None, :, None, None]).reshape(B, E, n_patches)
        ref = ref.transpose(0, 2, 1)
        err = float(jnp.max(jnp.abs(y - ref)))
        assert err <= tol, (str(compute_dtype), err)

    key = jax.random.PRNGKey(0)
    k1, k2, k3, k4 = jax.random.split(key, 4)

    # PyTorch-parity f32 operand path (full-K single block, W resident).
    run_case(k1, B=2, C=3, IMG=64, P=8, E=256, compute_dtype=jnp.float32, tol=1e-5)
    # Default fast path: bf16 operands, f32 accumulation.
    run_case(k2, B=2, C=3, IMG=64, P=8, E=256, compute_dtype=jnp.bfloat16, tol=1e-5)
    # Multi-M-tile grid (2 parallel M tiles -> both v7x TensorCores get work).
    run_case(k3, B=2, C=3, IMG=128, P=8, E=128, compute_dtype=jnp.bfloat16, tol=1e-5)
    # K > 2048 fallback path (K = 3*32*32 = 3072 -> two un-padded K tiles).
    run_case(k4, B=2, C=3, IMG=128, P=32, E=128, compute_dtype=jnp.bfloat16, tol=1e-5)

    print("KERNEL_OK")
</pallas_src>

<mosaic_0001>
module attributes {stable_mosaic.version = 11 : i64} {
  func.func @_pe_matmul_kernel(%arg0: i32, %arg1: i32, %arg2: memref<128x192xf32, #tpu.memory_space<vmem>>, %arg3: memref<192x256xf32, #tpu.memory_space<vmem>>, %arg4: memref<1x256xf32, #tpu.memory_space<vmem>>, %arg5: memref<128x256xf32, #tpu.memory_space<vmem>>) attributes {dimension_semantics = [#tpu.dimension_semantics<parallel>, #tpu.dimension_semantics<parallel>], iteration_bounds = array<i64: 1, 1>, scalar_prefetch = 0 : i64, scratch_operands = 0 : i64, tpu.core_type = #tpu.core_type<tc>, window_params = [{transform_indices = @transform_0, window_bounds = array<i64: 128, 192>}, {transform_indices = @transform_1, window_bounds = array<i64: 192, 256>}, {transform_indices = @transform_2, window_bounds = array<i64: 1, 256>}, {transform_indices = @transform_3, window_bounds = array<i64: 128, 256>}]} {
    %c0 = arith.constant 0 : index
    %c0_0 = arith.constant 0 : index
    %0 = vector.load %arg2[%c0, %c0_0] : memref<128x192xf32, #tpu.memory_space<vmem>>, vector<128x192xf32>
    %c0_1 = arith.constant 0 : index
    %c0_2 = arith.constant 0 : index
    %1 = vector.load %arg3[%c0_1, %c0_2] : memref<192x256xf32, #tpu.memory_space<vmem>>, vector<192x256xf32>
    %cst = arith.constant dense<0.000000e+00> : vector<128x256xf32>
    %2 = tpu.matmul %0, %1, %cst {dimension_numbers = #tpu.dot_dimension_numbers<[1], [0], [0], [1], [0, 0, 1, 1], [], []>} : vector<128x192xf32>, vector<192x256xf32>, vector<128x256xf32> -> vector<128x256xf32>
    %c0_3 = arith.constant 0 : index
    %c0_4 = arith.constant 0 : index
    %3 = vector.load %arg4[%c0_3, %c0_4] : memref<1x256xf32, #tpu.memory_space<vmem>>, vector<1x256xf32>
    %4 = vector.broadcast %3 : vector<1x256xf32> to vector<128x256xf32>
    %5 = arith.addf %2, %4 : vector<128x256xf32>
    %c0_5 = arith.constant 0 : index
    %c0_6 = arith.constant 0 : index
    %6 = vector.load %arg5[%c0_5, %c0_6] : memref<128x256xf32, #tpu.memory_space<vmem>>, vector<128x256xf32>
    tpu.vector_store %arg5[%c0_5, %c0_6], %5 {strides = array<i32>} : memref<128x256xf32, #tpu.memory_space<vmem>>, vector<128x256xf32>,
    return
  }
  func.func @transform_0(%arg0: i32, %arg1: i32) -> (i32, i32) {
    %c0_i32 = arith.constant 0 : i32
    %c0_i32_0 = arith.constant 0 : i32
    return %arg0, %c0_i32 : i32, i32
  }
  func.func @transform_1(%arg0: i32, %arg1: i32) -> (i32, i32) {
    %c0_i32 = arith.constant 0 : i32
    %c0_i32_0 = arith.constant 0 : i32
    return %c0_i32, %arg1 : i32, i32
  }
  func.func @transform_2(%arg0: i32, %arg1: i32) -> (i32, i32) {
    %c0_i32 = arith.constant 0 : i32
    %c0_i32_0 = arith.constant 0 : i32
    return %c0_i32, %arg1 : i32, i32
  }
  func.func @transform_3(%arg0: i32, %arg1: i32) -> (i32, i32) {
    %c0_i32 = arith.constant 0 : i32
    return %arg0, %arg1 : i32, i32
  }
}

</mosaic_0001>

<bundles_post_ra>
// kernel: patch_embed_forward.1
= control target key start
LH: loop header
LB: loop body
LE: loop exit
PB: predicated region body
PF: predicated region fallthrough
CT: control target
= control target key end

     0   :  { %vm107_vm0 = vcmask 523264   ;;  %s810_s0 = inlined_call_operand.vmem [shape: f32[128,192], index: 0, kind: input, shape index: {}]   ;;  %s811_s1 = inlined_call_operand.vmem [shape: f32[192,256], index: 1, kind: input, shape index: {}]   ;;  %s812_s2 = inlined_call_operand.vmem [shape: f32[1,256], index: 2, kind: input, shape index: {}]   ;;  %s813_s3 = inlined_call_operand.hbm [shape: f32[128,256], index: 3, kind: output, shape index: {}]  }
   0x1   :  { %v48_v0 = vld [vmem:[%s811_s1 + $0x8] sm:$0xff]  ;;  %v50_v1 = vld [vmem:[%s811_s1 + $0x18] sm:$0xff]  ;;  %v47_v2 = vld [vmem:[%s811_s1] sm:$0xff] }
   0x2   :  { %v381_v3 = vpack.c.bf16 %v50_v1, %v48_v0  ;;  %v49_v4 = vld [vmem:[%s811_s1 + $0x10] sm:$0xff]  ;;  %v52_v5 = vld [vmem:[%s811_s1 + $0x28] sm:$0xff]  ;;  %v54_v6 = vld [vmem:[%s811_s1 + $0x38] sm:$0xff] }
   0x3   :  { %v383_v7 = vpack.c.bf16 %v49_v4, %v47_v2  ;;  %v385_v8 = vpack.c.bf16 %v54_v6, %v52_v5  ;;  %v51_v9 = vld [vmem:[%s811_s1 + $0x20] sm:$0xff]  ;;  %v53_v10 = vld [vmem:[%s811_s1 + $0x30] sm:$0xff]  ;;  %v56_v11 = vld [vmem:[%s811_s1 + $0x48] sm:$0xff] }
   0x4   :  { %382 = vmatprep.subr.bf16.mxu0 %v381_v3  ;;  %429 = vmatprep.subr.bf16.mxu1 %v381_v3  ;;  %v58_v12 = vld [vmem:[%s811_s1 + $0x58] sm:$0xff]  ;;  %v387_v13 = vpack.c.bf16 %v53_v10, %v51_v9  ;;  %v55_v15 = vld [vmem:[%s811_s1 + $0x40] sm:$0xff]  ;;  %v57_v16 = vld [vmem:[%s811_s1 + $0x50] sm:$0xff] }
   0x5   :  { %384 = vmatpush1.bf16.msra.mxu0 %v383_v7  ;;  %441 = vmatpush1.bf16.msra.mxu1 %v383_v7  ;;  %v389_v14 = vpack.c.bf16 %v58_v12, %v56_v11  ;;  %v60_v17 = vld [vmem:[%s811_s1 + $0x68] sm:$0xff]  ;;  %v62_v18 = vld [vmem:[%s811_s1 + $0x78] sm:$0xff]  ;;  %v391_v19 = vpack.c.bf16 %v57_v16, %v55_v15  ;;  %v59_v21 = vld [vmem:[%s811_s1 + $0x60] sm:$0xff] }
   0x6   :  { %386 = vmatprep.subr.bf16.mxu0 %v385_v8  ;;  %430 = vmatprep.subr.bf16.mxu1 %v385_v8  ;;  %v393_v20 = vpack.c.bf16 %v62_v18, %v60_v17  ;;  %v61_v22 = vld [vmem:[%s811_s1 + $0x70] sm:$0xff]  ;;  %v64_v23 = vld [vmem:[%s811_s1 + $0x88] sm:$0xff]  ;;  %v66_v24 = vld [vmem:[%s811_s1 + $0x98] sm:$0xff] }
   0x7   :  { %v395_v25 = vpack.c.bf16 %v61_v22, %v59_v21  ;;  %v397_v26 = vpack.c.bf16 %v66_v24, %v64_v23  ;;  %v63_v27 = vld [vmem:[%s811_s1 + $0x80] sm:$0xff]  ;;  %v65_v28 = vld [vmem:[%s811_s1 + $0x90] sm:$0xff]  ;;  %v68_v29 = vld [vmem:[%s811_s1 + $0xa8] sm:$0xff] }
   0x8   :  { %v70_v30 = vld [vmem:[%s811_s1 + $0xb8] sm:$0xff]  ;;  %v399_v31 = vpack.c.bf16 %v65_v28, %v63_v27  ;;  %v16_v32 = vld [vmem:[%s810_s0 + $0x8] sm:$0xff]  ;;  %v67_v35 = vld [vmem:[%s811_s1 + $0xa0] sm:$0xff] }
   0x9   :  { %388 = vmatpush1.bf16.msra.mxu0 %v387_v13  ;;  %442 = vmatpush1.bf16.msra.mxu1 %v387_v13  ;;  %v32_v33 = vld [vmem:[%s810_s0 + $0x88] sm:$0xff]  ;;  %v401_v34 = vpack.c.bf16 %v70_v30, %v68_v29  ;;  %v69_v36 = vld [vmem:[%s811_s1 + $0xb0] sm:$0xff]  ;;  %v74_v38 = vld [vmem:[%s811_s1 + $0xd8] sm:$0xff] }
   0xa   :  { %390 = vmatprep.subr.bf16.mxu0 %v389_v14  ;;  %431 = vmatprep.subr.bf16.mxu1 %v389_v14  ;;  %v72_v37 = vld [vmem:[%s811_s1 + $0xc8] sm:$0xff]  ;;  %v403_v39 = vpack.c.bf16 %v69_v36, %v67_v35  ;;  %v71_v41 = vld [vmem:[%s811_s1 + $0xc0] sm:$0xff]  ;;  %v73_v42 = vld [vmem:[%s811_s1 + $0xd0] sm:$0xff] }
   0xb   :  { %365 = vmatprep.mubr.msk.f32.mxu0 %vm107_vm0, %v16_v32  ;;  %373 = vmatprep.mubr.msk.f32.mxu1 %vm107_vm0, %v32_v33  ;;  %v405_v40 = vpack.c.bf16 %v74_v38, %v72_v37  ;;  %v76_v43 = vld [vmem:[%s811_s1 + $0xe8] sm:$0xff]  ;;  %v78_v44 = vld [vmem:[%s811_s1 + $0xf8] sm:$0xff]  ;;  %v407_v45 = vpack.c.bf16 %v73_v42, %v71_v41  ;;  %v75_v47 = vld [vmem:[%s811_s1 + $0xe0] sm:$0xff] }
   0xc   :  { %v409_v46 = vpack.c.bf16 %v78_v44, %v76_v43  ;;  %v77_v48 = vld [vmem:[%s811_s1 + $0xf0] sm:$0xff]  ;;  %v80_v49 = vld [vmem:[%s811_s1 + $0x108] sm:$0xff]  ;;  %v82_v50 = vld [vmem:[%s811_s1 + $0x118] sm:$0xff] }
   0xd   :  { %392 = vmatpush1.bf16.msra.mxu0 %v391_v19  ;;  %443 = vmatpush1.bf16.msra.mxu1 %v391_v19 }
   0xe   :  { %394 = vmatprep.subr.bf16.mxu0 %v393_v20  ;;  %432 = vmatprep.subr.bf16.mxu1 %v393_v20 }
  0x11   :  { %396 = vmatpush1.bf16.msra.mxu0 %v395_v25  ;;  %444 = vmatpush1.bf16.msra.mxu1 %v395_v25 }
  0x12   :  { %398 = vmatprep.subr.bf16.mxu0 %v397_v26  ;;  %433 = vmatprep.subr.bf16.mxu1 %v397_v26 }
  0x15   :  { %400 = vmatpush1.bf16.msra.mxu0 %v399_v31  ;;  %445 = vmatpush1.bf16.msra.mxu1 %v399_v31 }
  0x16   :  { %402 = vmatprep.subr.bf16.mxu0 %v401_v34  ;;  %434 = vmatprep.subr.bf16.mxu1 %v401_v34 }
  0x19   :  { %404 = vmatpush1.bf16.msra.mxu0 %v403_v39  ;;  %446 = vmatpush1.bf16.msra.mxu1 %v403_v39 }
  0x1a   :  { %406 = vmatprep.subr.bf16.mxu0 %v405_v40  ;;  %435 = vmatprep.subr.bf16.mxu1 %v405_v40 }
  0x1b   :  { %8 = vsyncpa [#allocation3], 0  ;;  %v411_v51 = vpack.c.bf16 %v77_v48, %v75_v47  ;;  %v413_v52 = vpack.c.bf16 %v82_v50, %v80_v49  ;;  %v79_v53 = vld [vmem:[%s811_s1 + $0x100] sm:$0xff]  ;;  %v81_v54 = vld [vmem:[%s811_s1 + $0x110] sm:$0xff]  ;;  %v97_v40 = vlaneseq }
  0x1c   :  { %v84_v55 = vld [vmem:[%s811_s1 + $0x128] sm:$0xff]  ;;  %v86_v56 = vld [vmem:[%s811_s1 + $0x138] sm:$0xff]  ;;  %v415_v57 = vpack.c.bf16 %v81_v54, %v79_v53  ;;  %v83_v59 = vld [vmem:[%s811_s1 + $0x120] sm:$0xff] }
  0x1d   :  { %408 = vmatpush1.bf16.msra.mxu0 %v407_v45  ;;  %447 = vmatpush1.bf16.msra.mxu1 %v407_v45  ;;  %v417_v58 = vpack.c.bf16 %v86_v56, %v84_v55  ;;  %v85_v60 = vld [vmem:[%s811_s1 + $0x130] sm:$0xff]  ;;  %v88_v61 = vld [vmem:[%s811_s1 + $0x148] sm:$0xff]  ;;  %v90_v62 = vld [vmem:[%s811_s1 + $0x158] sm:$0xff]  ;;  %v98_v41 = vshrl.u32 %v97_v40, 7 }
  0x1e   :  { %410 = vmatprep.subr.bf16.mxu0 %v409_v46  ;;  %436 = vmatprep.subr.bf16.mxu1 %v409_v46  ;;  %v419_v63 = vpack.c.bf16 %v85_v60, %v83_v59  ;;  %v421_v0 = vpack.c.bf16 %v90_v62, %v88_v61  ;;  %v87_v1 = vld [vmem:[%s811_s1 + $0x140] sm:$0xff]  ;;  %v89_v2 = vld [vmem:[%s811_s1 + $0x150] sm:$0xff]  ;;  %v92_v3 = vld [vmem:[%s811_s1 + $0x168] sm:$0xff] }
  0x1f   :  { %v94_v4 = vld [vmem:[%s811_s1 + $0x178] sm:$0xff]  ;;  %v423_v5 = vpack.c.bf16 %v89_v2, %v87_v1  ;;  %v91_v7 = vld [vmem:[%s811_s1 + $0x160] sm:$0xff]  ;;  %v93_v8 = vld [vmem:[%s811_s1 + $0x170] sm:$0xff]  ;;  %v99_v42 = vsub.s32 0, %v98_v41  ;;  %v103_v44 = vsub.s32 1, %v98_v41 }
  0x20   :  { %v425_v6 = vpack.c.bf16 %v94_v4, %v92_v3  ;;  %v427_v9 = vpack.c.bf16 %v93_v8, %v91_v7  ;;  %v15_v10 = vld [vmem:[%s810_s0] sm:$0xff]  ;;  %v18_v12 = vld [vmem:[%s810_s0 + $0x18] sm:$0xff]  ;;  %v17_v14 = vld [vmem:[%s810_s0 + $0x10] sm:$0xff] }
  0x21   :  { %412 = vmatpush1.bf16.msra.mxu0 %v411_v51  ;;  %448 = vmatpush1.bf16.msra.mxu1 %v411_v51  ;;  %v31_v11 = vld [vmem:[%s810_s0 + $0x80] sm:$0xff]  ;;  %v34_v13 = vld [vmem:[%s810_s0 + $0x98] sm:$0xff]  ;;  %v33_v15 = vld [vmem:[%s810_s0 + $0x90] sm:$0xff] }
  0x22   :  { %414 = vmatprep.subr.bf16.mxu0 %v413_v52  ;;  %437 = vmatprep.subr.bf16.mxu1 %v413_v52  ;;  %v20_v16 = vld [vmem:[%s810_s0 + $0x28] sm:$0xff]  ;;  %v19_v18 = vld [vmem:[%s810_s0 + $0x20] sm:$0xff]  ;;  %v22_v20 = vld [vmem:[%s810_s0 + $0x38] sm:$0xff] }
  0x23   :  { %v36_v17 = vld [vmem:[%s810_s0 + $0xa8] sm:$0xff]  ;;  %v35_v19 = vld [vmem:[%s810_s0 + $0xa0] sm:$0xff]  ;;  %v38_v21 = vld [vmem:[%s810_s0 + $0xb8] sm:$0xff] }
  0x24   :  { %v21_v22 = vld [vmem:[%s810_s0 + $0x30] sm:$0xff]  ;;  %v24_v24 = vld [vmem:[%s810_s0 + $0x48] sm:$0xff]  ;;  %v23_v26 = vld [vmem:[%s810_s0 + $0x40] sm:$0xff] }
  0x25   :  { %416 = vmatpush1.bf16.msra.mxu0 %v415_v57  ;;  %449 = vmatpush1.bf16.msra.mxu1 %v415_v57  ;;  %v37_v23 = vld [vmem:[%s810_s0 + $0xb0] sm:$0xff]  ;;  %v40_v25 = vld [vmem:[%s810_s0 + $0xc8] sm:$0xff]  ;;  %v39_v27 = vld [vmem:[%s810_s0 + $0xc0] sm:$0xff] }
  0x26   :  { %418 = vmatprep.subr.bf16.mxu0 %v417_v58  ;;  %438 = vmatprep.subr.bf16.mxu1 %v417_v58  ;;  %v26_v28 = vld [vmem:[%s810_s0 + $0x58] sm:$0xff]  ;;  %v25_v30 = vld [vmem:[%s810_s0 + $0x50] sm:$0xff]  ;;  %v28_v32 = vld [vmem:[%s810_s0 + $0x68] sm:$0xff] }
  0x27   :  { %v42_v29 = vld [vmem:[%s810_s0 + $0xd8] sm:$0xff]  ;;  %v41_v31 = vld [vmem:[%s810_s0 + $0xd0] sm:$0xff]  ;;  %v44_v33 = vld [vmem:[%s810_s0 + $0xe8] sm:$0xff] }
  0x28   :  { %v27_v34 = vld [vmem:[%s810_s0 + $0x60] sm:$0xff]  ;;  %v30_v36 = vld [vmem:[%s810_s0 + $0x78] sm:$0xff]  ;;  %v29_v38 = vld [vmem:[%s810_s0 + $0x70] sm:$0xff] }
  0x29   :  { %420 = vmatpush1.bf16.msra.mxu0 %v419_v63  ;;  %450 = vmatpush1.bf16.msra.mxu1 %v419_v63  ;;  %v43_v35 = vld [vmem:[%s810_s0 + $0xe0] sm:$0xff]  ;;  %v46_v37 = vld [vmem:[%s810_s0 + $0xf8] sm:$0xff]  ;;  %v45_v39 = vld [vmem:[%s810_s0 + $0xf0] sm:$0xff]  ;;  %s480_s0 = smov [#allocation2]  }
  0x2a   :  { %422 = vmatprep.subr.bf16.mxu0 %v421_v0  ;;  %439 = vmatprep.subr.bf16.mxu1 %v421_v0  ;;  %v95_v43 = vld [vmem:[%s812_s2] sm:$0x3]  ;;  %s354_s2 = sshll.u32 %s480_s0, 4  ;;  %s355_s2 = int_to_ptr.vmem [resolvable:$true] %s354_s2 }
  0x2b   :  { %v762_v45 = vrot.slane %v95_v43, %v99_v42  ;;  %v764_v46 = vrot.slane %v95_v43, %v103_v44  ;;  %s456_s1 = scalar_lea.vmem %s355_s2, 4096  ;;  %p461_p1 = scmp.lt.s32.totalorder %s355_s2, %s355_s2 }
  0x2c   :  { %p457_p0 = scmp.ne.s32.totalorder %s355_s2, %s456_s1  ;;  %p462_p2 = scmp.lt.s32.totalorder %s456_s1, %s456_s1 }
  0x2d   :  { %424 = vmatpush1.bf16.msra.mxu0 %v423_v5  ;;  %451 = vmatpush1.bf16.msra.mxu1 %v423_v5 }
  0x2e   :  { %426 = vmatprep.subr.bf16.mxu0 %v425_v6  ;;  %440 = vmatprep.subr.bf16.mxu1 %v425_v6  ;;  %p463_p3 = por %p462_p2, %p461_p1 }
  0x30   :  { %p464_p4 = pnand %p463_p3, %p457_p0 }
  0x31   :  { %428 = vmatpush1.bf16.msra.mxu0 %v427_v9  ;;  %452 = vmatpush1.bf16.msra.mxu1 %v427_v9 }
  0x34   :  { %221 = vmatmul.mubr.f32.vlgmr.msra.gmra.mrb[0].mxu0 %v15_v10  ;;  %269 = vmatmul.mubr.f32.vlgmr.msra.gmra.mrb[0].mxu1 %v31_v11 }
  0x35   :  { %366 = vmatprep.mubr.msk.f32.mxu0 %vm107_vm0, %v18_v12  ;;  %374 = vmatprep.mubr.msk.f32.mxu1 %vm107_vm0, %v34_v13 }
  0x38   :  { %227 = vmatmul.mubr.f32.gmra.mrb[2].mxu0 %v17_v14  ;;  %275 = vmatmul.mubr.f32.gmra.mrb[2].mxu1 %v33_v15 }
  0x39   :  { %367 = vmatprep.mubr.msk.f32.mxu0 %vm107_vm0, %v20_v16  ;;  %375 = vmatprep.mubr.msk.f32.mxu1 %vm107_vm0, %v36_v17 }
  0x3c   :  { %233 = vmatmul.mubr.f32.gmra.mrb[4].mxu0 %v19_v18  ;;  %281 = vmatmul.mubr.f32.gmra.mrb[4].mxu1 %v35_v19 }
  0x3d   :  { %368 = vmatprep.mubr.msk.f32.mxu0 %vm107_vm0, %v22_v20  ;;  %376 = vmatprep.mubr.msk.f32.mxu1 %vm107_vm0, %v38_v21 }
  0x40   :  { %239 = vmatmul.mubr.f32.gmra.mrb[6].mxu0 %v21_v22  ;;  %287 = vmatmul.mubr.f32.gmra.mrb[6].mxu1 %v37_v23 }
  0x41   :  { %369 = vmatprep.mubr.msk.f32.mxu0 %vm107_vm0, %v24_v24  ;;  %377 = vmatprep.mubr.msk.f32.mxu1 %vm107_vm0, %v40_v25 }
  0x44   :  { %245 = vmatmul.mubr.f32.gmra.mrb[8].mxu0 %v23_v26  ;;  %293 = vmatmul.mubr.f32.gmra.mrb[8].mxu1 %v39_v27 }
  0x45   :  { %370 = vmatprep.mubr.msk.f32.mxu0 %vm107_vm0, %v26_v28  ;;  %378 = vmatprep.mubr.msk.f32.mxu1 %vm107_vm0, %v42_v29 }
  0x48   :  { %251 = vmatmul.mubr.f32.gmra.mrb[10].mxu0 %v25_v30  ;;  %299 = vmatmul.mubr.f32.gmra.mrb[10].mxu1 %v41_v31 }
  0x49   :  { %371 = vmatprep.mubr.msk.f32.mxu0 %vm107_vm0, %v28_v32  ;;  %379 = vmatprep.mubr.msk.f32.mxu1 %vm107_vm0, %v44_v33 }
  0x4c   :  { %257 = vmatmul.mubr.f32.gmra.mrb[12].mxu0 %v27_v34  ;;  %305 = vmatmul.mubr.f32.gmra.mrb[12].mxu1 %v43_v35 }
  0x4d   :  { %372 = vmatprep.mubr.msk.f32.mxu0 %vm107_vm0, %v30_v36  ;;  %380 = vmatprep.mubr.msk.f32.mxu1 %vm107_vm0, %v46_v37 }
  0x50   :  { %263 = vmatmul.mubr.f32.gmra.mrb[14].mxu0 %v29_v38  ;;  %311 = vmatmul.mubr.f32.gmra.mrb[14].mxu1 %v45_v39 }
 0x107   :  { %v222_v47 = vpop.f32.mrb[0].mxu0  ;;  %v270_v48 = vpop.f32.mrb[0].mxu1 }
 0x108   :  { %v223_v49 = vadd.f32 %v222_v47, %v762_v45  ;;  %v271_v50 = vadd.f32 %v270_v48, %v762_v45  ;;  %v224_v51 = vpop.f32.mrb[1].mxu0  ;;  %v272_v52 = vpop.f32.mrb[1].mxu1 }
 0x109   :  { %v225_v53 = vadd.f32 %v224_v51, %v764_v46  ;;  %v273_v54 = vadd.f32 %v272_v52, %v764_v46 }
 0x10a   :  { %317 = vst [vmem:[#allocation2] sm:$0xff] %v223_v49  ;;  %333 = vst [vmem:[#allocation2 + $0x80] sm:$0xff] %v271_v50 }
 0x10b   :  { %318 = vst [vmem:[#allocation2 + $0x8] sm:$0xff] %v225_v53  ;;  %334 = vst [vmem:[#allocation2 + $0x88] sm:$0xff] %v273_v54  ;;  %v228_v55 = vpop.f32.mrb[2].mxu0  ;;  %v276_v56 = vpop.f32.mrb[2].mxu1 }
 0x10c   :  { %v229_v57 = vadd.f32 %v228_v55, %v762_v45  ;;  %v277_v58 = vadd.f32 %v276_v56, %v762_v45  ;;  %v230_v59 = vpop.f32.mrb[3].mxu0  ;;  %v278_v60 = vpop.f32.mrb[3].mxu1 }
 0x10d   :  { %v231_v61 = vadd.f32 %v230_v59, %v764_v46  ;;  %v279_v62 = vadd.f32 %v278_v60, %v764_v46 }
 0x10e   :  { %319 = vst [vmem:[#allocation2 + $0x10] sm:$0xff] %v229_v57  ;;  %335 = vst [vmem:[#allocation2 + $0x90] sm:$0xff] %v277_v58 }
 0x10f   :  { %320 = vst [vmem:[#allocation2 + $0x18] sm:$0xff] %v231_v61  ;;  %336 = vst [vmem:[#allocation2 + $0x98] sm:$0xff] %v279_v62  ;;  %v234_v63 = vpop.f32.mrb[4].mxu0  ;;  %v282_v0 = vpop.f32.mrb[4].mxu1 }
 0x110   :  { %v235_v1 = vadd.f32 %v234_v63, %v762_v45  ;;  %v283_v2 = vadd.f32 %v282_v0, %v762_v45  ;;  %v236_v3 = vpop.f32.mrb[5].mxu0  ;;  %v284_v4 = vpop.f32.mrb[5].mxu1 }
 0x111   :  { %v237_v5 = vadd.f32 %v236_v3, %v764_v46  ;;  %v285_v6 = vadd.f32 %v284_v4, %v764_v46 }
 0x112   :  { %321 = vst [vmem:[#allocation2 + $0x20] sm:$0xff] %v235_v1  ;;  %337 = vst [vmem:[#allocation2 + $0xa0] sm:$0xff] %v283_v2 }
 0x113   :  { %322 = vst [vmem:[#allocation2 + $0x28] sm:$0xff] %v237_v5  ;;  %338 = vst [vmem:[#allocation2 + $0xa8] sm:$0xff] %v285_v6  ;;  %v240_v7 = vpop.f32.mrb[6].mxu0  ;;  %v288_v8 = vpop.f32.mrb[6].mxu1 }
 0x114   :  { %v241_v9 = vadd.f32 %v240_v7, %v762_v45  ;;  %v289_v10 = vadd.f32 %v288_v8, %v762_v45  ;;  %v242_v11 = vpop.f32.mrb[7].mxu0  ;;  %v290_v12 = vpop.f32.mrb[7].mxu1 }
 0x115   :  { %v243_v13 = vadd.f32 %v242_v11, %v764_v46  ;;  %v291_v14 = vadd.f32 %v290_v12, %v764_v46 }
 0x116   :  { %323 = vst [vmem:[#allocation2 + $0x30] sm:$0xff] %v241_v9  ;;  %339 = vst [vmem:[#allocation2 + $0xb0] sm:$0xff] %v289_v10 }
 0x117   :  { %324 = vst [vmem:[#allocation2 + $0x38] sm:$0xff] %v243_v13  ;;  %340 = vst [vmem:[#allocation2 + $0xb8] sm:$0xff] %v291_v14  ;;  %v246_v15 = vpop.f32.mrb[8].mxu0  ;;  %v294_v16 = vpop.f32.mrb[8].mxu1 }
 0x118   :  { %v247_v17 = vadd.f32 %v246_v15, %v762_v45  ;;  %v295_v18 = vadd.f32 %v294_v16, %v762_v45  ;;  %v248_v19 = vpop.f32.mrb[9].mxu0  ;;  %v296_v20 = vpop.f32.mrb[9].mxu1 }
 0x119   :  { %v249_v21 = vadd.f32 %v248_v19, %v764_v46  ;;  %v297_v22 = vadd.f32 %v296_v20, %v764_v46 }
 0x11a   :  { %325 = vst [vmem:[#allocation2 + $0x40] sm:$0xff] %v247_v17  ;;  %341 = vst [vmem:[#allocation2 + $0xc0] sm:$0xff] %v295_v18 }
 0x11b   :  { %326 = vst [vmem:[#allocation2 + $0x48] sm:$0xff] %v249_v21  ;;  %342 = vst [vmem:[#allocation2 + $0xc8] sm:$0xff] %v297_v22  ;;  %v252_v23 = vpop.f32.mrb[10].mxu0  ;;  %v300_v24 = vpop.f32.mrb[10].mxu1 }
 0x11c   :  { %v253_v25 = vadd.f32 %v252_v23, %v762_v45  ;;  %v301_v26 = vadd.f32 %v300_v24, %v762_v45  ;;  %v254_v27 = vpop.f32.mrb[11].mxu0  ;;  %v302_v28 = vpop.f32.mrb[11].mxu1 }
 0x11d   :  { %v255_v29 = vadd.f32 %v254_v27, %v764_v46  ;;  %v303_v30 = vadd.f32 %v302_v28, %v764_v46 }
 0x11e   :  { %327 = vst [vmem:[#allocation2 + $0x50] sm:$0xff] %v253_v25  ;;  %343 = vst [vmem:[#allocation2 + $0xd0] sm:$0xff] %v301_v26 }
 0x11f   :  { %328 = vst [vmem:[#allocation2 + $0x58] sm:$0xff] %v255_v29  ;;  %344 = vst [vmem:[#allocation2 + $0xd8] sm:$0xff] %v303_v30  ;;  %v258_v31 = vpop.f32.mrb[12].mxu0  ;;  %v306_v32 = vpop.f32.mrb[12].mxu1 }
 0x120   :  { %v259_v33 = vadd.f32 %v258_v31, %v762_v45  ;;  %v307_v34 = vadd.f32 %v306_v32, %v762_v45  ;;  %v260_v35 = vpop.f32.mrb[13].mxu0  ;;  %v308_v36 = vpop.f32.mrb[13].mxu1 }
 0x121   :  { %v261_v37 = vadd.f32 %v260_v35, %v764_v46  ;;  %v309_v38 = vadd.f32 %v308_v36, %v764_v46 }
 0x122   :  { %329 = vst [vmem:[#allocation2 + $0x60] sm:$0xff] %v259_v33  ;;  %345 = vst [vmem:[#allocation2 + $0xe0] sm:$0xff] %v307_v34 }
 0x123   :  { %330 = vst [vmem:[#allocation2 + $0x68] sm:$0xff] %v261_v37  ;;  %346 = vst [vmem:[#allocation2 + $0xe8] sm:$0xff] %v309_v38  ;;  %v264_v39 = vpop.f32.mrb[14].mxu0  ;;  %v312_v40 = vpop.f32.mrb[14].mxu1 }
 0x124   :  { %v265_v41 = vadd.f32 %v264_v39, %v762_v45  ;;  %v313_v42 = vadd.f32 %v312_v40, %v762_v45  ;;  %v266_v43 = vpop.f32.mrb[15].mxu0  ;;  %v314_v44 = vpop.f32.mrb[15].mxu1 }
 0x125   :  { %v267_v47 = vadd.f32 %v266_v43, %v764_v46  ;;  %v315_v48 = vadd.f32 %v314_v44, %v764_v46 }
 0x126   :  { %331 = vst [vmem:[#allocation2 + $0x70] sm:$0xff] %v265_v41  ;;  %347 = vst [vmem:[#allocation2 + $0xf0] sm:$0xff] %v313_v42 }
 0x127   :  { %332 = vst [vmem:[#allocation2 + $0x78] sm:$0xff] %v267_v47  ;;  %348 = vst [vmem:[#allocation2 + $0xf8] sm:$0xff] %v315_v48 }
 0x128   :  { %467 = shalt.err (!%p464_p4)
}
 0x129   :  { %s468_s12 = scalar_lea.hbm %s813_s3, 4096 }
 0x12a   :  { %p469_p5 = scmp.ne.s32.totalorder %s813_s3, %s468_s12  ;;  %p472_p6 = scmp.lt.u32.totalorder %s468_s12, %s813_s3 }
 0x12c   :  { %p474_p7 = pnand %p472_p6, %p469_p5 }
 0x12e   :  { %477 = shalt.err (!%p474_p7)
}
 0x12f   :  { %s481_s17 = smov 256   ;;  %s482_s18 = smov 16  }
 0x130   :  { %360 = dma.vmem_to_hbm [thread:$0]  %s355_s2, 4096, %s813_s3, [#allocation3], %s481_s17, %s481_s17, %s482_s18  }
 0x131   :  { %478 = dma.done.wait [#allocation3], 4096  }
 0x132   :  { %479 = vsyncadd [#allocation3], 4294963200 }
 0x133   :  { %364 = vsyncpa [#allocation3], 1 }

</bundles_post_ra>
